<compile_context>
chip_gen: v7x
topology: tpu7x:2x2x1
jax: 0.10.0
libtpu: 0.0.40
codegen_flags: <defaults>
</compile_context>

<pallas_src>
import functools

import jax
import jax.numpy as jnp
from jax.experimental import pallas as pl
from jax.experimental.pallas import tpu as pltpu


# ---------------------------------------------------------------------------
# Kernels
# ---------------------------------------------------------------------------
def _rmsnorm_kernel(x_ref, w_ref, o_ref, *, eps):
    """Plain path: one logical row per block row.  x_ref: (tile, dim)."""
    x32 = x_ref[...].astype(jnp.float32)                       # x.float()
    ms = jnp.mean(x32 * x32, axis=-1, keepdims=True)           # mean(x^2, -1, keepdim)
    normed = (x32 * jax.lax.rsqrt(ms + eps)).astype(x_ref.dtype)  # .type_as(x)
    o_ref[...] = (normed.astype(jnp.float32)
                  * w_ref[...].astype(jnp.float32)).astype(o_ref.dtype)


def _rmsnorm_folded_kernel(x_ref, w_ref, m_ref, o_ref, *, eps):
    """dim < 128 lane-dense path: `fold = 128//dim` logical rows per lane row.

    m_ref is a (128, 128) block-diagonal averaging matrix (1/dim inside each
    fold-group), so `s @ m` gives each logical row's mean already broadcast
    across that row's `dim` lanes.  One MXU op on an otherwise-idle unit;
    stores stay unmasked full-lane vst.
    """
    x32 = x_ref[...].astype(jnp.float32)
    s = x32 * x32
    ms = jnp.dot(s, m_ref[...], preferred_element_type=jnp.float32,
                 precision=jax.lax.Precision.HIGHEST)
    normed = (x32 * jax.lax.rsqrt(ms + eps)).astype(x_ref.dtype)
    o_ref[...] = (normed.astype(jnp.float32)
                  * w_ref[...].astype(jnp.float32)).astype(o_ref.dtype)


# ---------------------------------------------------------------------------
# Generation-aware sizing
# ---------------------------------------------------------------------------
def _vmem_budgets():
    """(tile_budget_bytes, vmem_limit_bytes, num_tensorcores)."""
    try:
        cap = int(pltpu.get_tpu_info().vmem_capacity_bytes)
    except Exception:
        cap = 64 << 20                      # conservative: v7x per-TC VMEM
    tile_budget = cap // 2                  # 128 MiB -> 64 MiB;  64 MiB -> 32 MiB
    vmem_limit = (cap * 3) // 4             # 96 MiB / 48 MiB, above scoped defaults
    # TODO(synk): query TensorCore count directly; 64 MiB per-TC VMEM is used as
    # the v7x (2-TC) signature for now.
    cores = 2 if cap <= (64 << 20) else 1
    return tile_budget, vmem_limit, cores


def _choose_tile_rows(rows, dim, in_dtype, out_dtype, vmem_budget, num_cores):
    """Largest sublane-packed row tile that fits the byte budget."""
    in_b = jnp.dtype(in_dtype).itemsize
    out_b = jnp.dtype(out_dtype).itemsize
    packing = max(1, 4 // max(1, in_b))     # 8 f32 / 16 bf16 / 32 int8 rows per vreg
    min_rows = 8 * packing
    # Per-row footprint: 2x double-buffered input + 2x double-buffered output
    # + ~2 live f32 intermediates inside the body.
    bytes_per_row = dim * (2 * in_b + 2 * out_b + 2 * 4)
    cap = max(min_rows, (vmem_budget // bytes_per_row) // min_rows * min_rows)
    tile = min(cap, pl.cdiv(rows, min_rows) * min_rows)
    # Multi-TC chips (v7x): keep the step count a multiple of the core count so
    # "parallel" sharding is load-balanced (grid of 3 over 2 TCs = 33% imbalance).
    # Single-TC chips skip this — splitting would be pure per-step overhead.
    if num_cores > 1 and tile > min_rows:
        steps = pl.cdiv(rows, tile)
        if steps % num_cores != 0:
            target = pl.cdiv(steps, num_cores) * num_cores
            tile = max(min_rows, pl.cdiv(pl.cdiv(rows, target), min_rows) * min_rows)
    return tile


# ---------------------------------------------------------------------------
# Wrapper
# ---------------------------------------------------------------------------
def rmsnorm(x, weight, eps=1e-6, tile_rows=None, out_dtype=None):
    """RMSNorm over the last axis of `x`, scaled by `weight` (shape [dim]).

    out_dtype defaults to PyTorch's promote(x.dtype, weight.dtype); pass
    out_dtype=x.dtype to halve HBM write traffic when a bf16 output is
    acceptable with an f32 weight (deviates from strict PyTorch promotion).
    """
    orig_shape = x.shape
    dim = orig_shape[-1]
    assert weight.shape == (dim,)

    rows = 1
    for s in orig_shape[:-1]:
        rows *= s

    if out_dtype is None:
        out_dtype = jnp.promote_types(x.dtype, weight.dtype)

    tile_budget, vmem_limit, cores = _vmem_budgets()

    # Lane-dense fold for small hidden sizes: fold 128//dim logical rows into
    # one 128-wide lane row (contiguous -> copy-free reshape).
    fold = 1
    if dim < 128 and 128 % dim == 0:
        k = 128 // dim
        if rows >= k and rows % k == 0:
            fold = k

    kdim = fold * dim
    krows = rows // fold
    x2d = x.reshape(krows, kdim)
    w_row = (jnp.tile(weight, fold) if fold > 1 else weight).reshape(1, kdim)

    if tile_rows is None:
        tile_rows = _choose_tile_rows(krows, kdim, x.dtype, out_dtype,
                                      tile_budget, cores)

    # No wrapper-side padding: Pallas masks the ragged final block
    # (block last dim == full kdim, second-to-last is a multiple of 8).
    grid_rows = pl.cdiv(krows, tile_rows)

    in_specs = [
        pl.BlockSpec((tile_rows, kdim), lambda i: (i, 0)),
        pl.BlockSpec((1, kdim), lambda i: (0, 0)),        # weight stays resident
    ]
    operands = [x2d, w_row]
    if fold > 1:
        g = jnp.arange(kdim, dtype=jnp.int32) // dim
        m_mat = (g[:, None] == g[None, :]).astype(jnp.float32) / float(dim)
        in_specs.append(pl.BlockSpec((kdim, kdim), lambda i: (0, 0)))  # resident
        operands.append(m_mat)
        kernel = functools.partial(_rmsnorm_folded_kernel, eps=eps)
    else:
        kernel = functools.partial(_rmsnorm_kernel, eps=eps)

    out = pl.pallas_call(
        kernel,
        out_shape=jax.ShapeDtypeStruct((krows, kdim), out_dtype),
        grid_spec=pltpu.PrefetchScalarGridSpec(
            num_scalar_prefetch=0,
            grid=(grid_rows,),
            in_specs=in_specs,
            out_specs=pl.BlockSpec((tile_rows, kdim), lambda i: (i, 0)),
        ),
        compiler_params=pltpu.CompilerParams(
            dimension_semantics=("parallel",),
            vmem_limit_bytes=vmem_limit,
        ),
    )(*operands)

    return out.reshape(orig_shape)


# ---------------------------------------------------------------------------
# Demo / self-check
# ---------------------------------------------------------------------------
if __name__ == "__main__":
    key = jax.random.PRNGKey(0)
    batch, seq, dim = 2, 8, 32
    kx, kx2, kw = jax.random.split(key, 3)

    def ref_rmsnorm(x, w, eps=1e-6):
        x32 = x.astype(jnp.float32)
        n = x32 * jax.lax.rsqrt(jnp.mean(x32 * x32, axis=-1, keepdims=True) + eps)
        n = n.astype(x.dtype)
        return (n.astype(jnp.float32) * w.astype(jnp.float32)).astype(
            jnp.promote_types(x.dtype, w.dtype))

    # 1) Module-default weight (torch.ones(dim)); rows % (128//dim) == 0
    #    -> exercises the lane-dense folded path (+ a partial final block).
    x = jax.random.normal(kx, (batch, seq, dim), dtype=jnp.float32)
    w_ones = jnp.ones((dim,), dtype=jnp.float32)
    out = jax.block_until_ready(rmsnorm(x, w_ones, eps=1e-6))
    ref = ref_rmsnorm(x, w_ones)
    assert out.shape == x.shape and out.dtype == ref.dtype
    assert jnp.allclose(out, ref, atol=1e-5, rtol=1e-5)

    # 2) Ragged row count (rows=21) with a non-trivial weight -> exercises the
    #    plain path and Pallas's tail-block masking (no wrapper pad/slice).
    x2 = jax.random.normal(kx2, (3, 7, dim), dtype=jnp.float32)
    w2 = 1.0 + 0.1 * jax.random.normal(kw, (dim,), dtype=jnp.float32)
    out2 = jax.block_until_ready(rmsnorm(x2, w2, eps=1e-6))
    ref2 = ref_rmsnorm(x2, w2)
    assert out2.shape == x2.shape
    assert jnp.allclose(out2, ref2, atol=1e-5, rtol=1e-5)

    print("KERNEL_OK")
</pallas_src>

<mosaic_0001>
module attributes {stable_mosaic.version = 11 : i64} {
  func.func @_rmsnorm_folded_kernel(%arg0: i32, %arg1: memref<8x128xf32, #tpu.memory_space<vmem>>, %arg2: memref<1x128xf32, #tpu.memory_space<vmem>>, %arg3: memref<128x128xf32, #tpu.memory_space<vmem>>, %arg4: memref<8x128xf32, #tpu.memory_space<vmem>>) attributes {dimension_semantics = [#tpu.dimension_semantics<parallel>], iteration_bounds = array<i64: 1>, scalar_prefetch = 0 : i64, scratch_operands = 0 : i64, tpu.core_type = #tpu.core_type<tc>, window_params = [{transform_indices = @transform_0, window_bounds = array<i64: 8, 128>}, {pipeline_mode = #tpu.pipeline_mode<synchronous>, transform_indices = @transform_1, window_bounds = array<i64: 1, 128>}, {pipeline_mode = #tpu.pipeline_mode<synchronous>, transform_indices = @transform_2, window_bounds = array<i64: 128, 128>}, {transform_indices = @transform_3, window_bounds = array<i64: 8, 128>}]} {
    %c0 = arith.constant 0 : index
    %c0_0 = arith.constant 0 : index
    %0 = vector.load %arg1[%c0, %c0_0] : memref<8x128xf32, #tpu.memory_space<vmem>>, vector<8x128xf32>
    %1 = arith.mulf %0, %0 : vector<8x128xf32>
    %c0_1 = arith.constant 0 : index
    %c0_2 = arith.constant 0 : index
    %2 = vector.load %arg3[%c0_1, %c0_2] : memref<128x128xf32, #tpu.memory_space<vmem>>, vector<128x128xf32>
    %cst = arith.constant dense<0.000000e+00> : vector<8x128xf32>
    %3 = tpu.matmul %1, %2, %cst {dimension_numbers = #tpu.dot_dimension_numbers<[1], [0], [0], [1], [0, 0, 1, 1], [], []>, precision = #tpu.contract_precision<fp32>} : vector<8x128xf32>, vector<128x128xf32>, vector<8x128xf32> -> vector<8x128xf32>
    %cst_3 = arith.constant 9.99999997E-7 : f32
    %4 = vector.broadcast %cst_3 : f32 to vector<8x128xf32>
    %5 = arith.addf %3, %4 : vector<8x128xf32>
    %6 = math.rsqrt %5 : vector<8x128xf32>
    %7 = arith.mulf %0, %6 : vector<8x128xf32>
    %c0_4 = arith.constant 0 : index
    %c0_5 = arith.constant 0 : index
    %8 = vector.load %arg2[%c0_4, %c0_5] : memref<1x128xf32, #tpu.memory_space<vmem>>, vector<1x128xf32>
    %9 = vector.broadcast %8 : vector<1x128xf32> to vector<8x128xf32>
    %10 = arith.mulf %7, %9 : vector<8x128xf32>
    %c0_6 = arith.constant 0 : index
    %c0_7 = arith.constant 0 : index
    %11 = vector.load %arg4[%c0_6, %c0_7] : memref<8x128xf32, #tpu.memory_space<vmem>>, vector<8x128xf32>
    tpu.vector_store %arg4[%c0_6, %c0_7], %10 {strides = array<i32>} : memref<8x128xf32, #tpu.memory_space<vmem>>, vector<8x128xf32>,
    return
  }
  func.func @transform_0(%arg0: i32) -> (i32, i32) {
    %c0_i32 = arith.constant 0 : i32
    %c0_i32_0 = arith.constant 0 : i32
    return %arg0, %c0_i32 : i32, i32
  }
  func.func @transform_1(%arg0: i32) -> (i32, i32) {
    %c0_i32 = arith.constant 0 : i32
    %c0_i32_0 = arith.constant 0 : i32
    %c0_i32_1 = arith.constant 0 : i32
    return %c0_i32, %c0_i32_0 : i32, i32
  }
  func.func @transform_2(%arg0: i32) -> (i32, i32) {
    %c0_i32 = arith.constant 0 : i32
    %c0_i32_0 = arith.constant 0 : i32
    %c0_i32_1 = arith.constant 0 : i32
    return %c0_i32, %c0_i32_0 : i32, i32
  }
  func.func @transform_3(%arg0: i32) -> (i32, i32) {
    %c0_i32 = arith.constant 0 : i32
    %c0_i32_0 = arith.constant 0 : i32
    return %arg0, %c0_i32 : i32, i32
  }
}

</mosaic_0001>

<bundles_post_ra>
// kernel: tpu_custom_call.1
= control target key start
LH: loop header
LB: loop body
LE: loop exit
PB: predicated region body
PF: predicated region fallthrough
CT: control target
= control target key end

     0   :  { %8 = vsyncpa [#allocation3], 0  ;;  %s1609_s0 = inlined_call_operand.hbm [shape: f32[4,128], index: 0, kind: input, shape index: {}]   ;;  %s1610_s1 = inlined_call_operand.vmem [shape: f32[1,128], index: 1, kind: input, shape index: {}]   ;;  %s1611_s2 = inlined_call_operand.hbm [shape: f32[128,128], index: 2, kind: input, shape index: {}]   ;;  %s1612_s3 = inlined_call_operand.hbm [shape: f32[4,128], index: 3, kind: output, shape index: {}]  }
   0x1   :  { %9 = vsyncpa [#allocation6], 0 }
   0x2   :  { %10 = vsyncpa [#allocation4], 0 }
   0x3   :  { %15 = vsyncadd [#allocation3], 64  ;;  %s1282_s12 = smov [#allocation2]   ;;  %s1210_s16 = scalar_lea.hbm %s1609_s0, 64 }
   0x4   :  { %s16_s13 = sshll.u32 %s1282_s12, 4  ;;  %p1211_p0 = scmp.ne.s32.totalorder %s1609_s0, %s1210_s16  ;;  %s17_s13 = int_to_ptr.vmem [resolvable:$true] %s16_s13 }
   0x5   :  { %p1214_p1 = scmp.lt.u32.totalorder %s1210_s16, %s1609_s0 }
   0x7   :  { %p1216_p2 = pnand %p1214_p1, %p1211_p0 }
   0x9   :  { %1219 = shalt.err (!%p1216_p2)
}
   0xa   :  { %s1220_s21 = scalar_lea.vmem %s17_s13, 64  ;;  %s1224_s22 = scalar_lea.vmem %s17_s13, 128 }
   0xb   :  { %p1221_p3 = scmp.ne.s32.totalorder %s17_s13, %s1220_s21  ;;  %p1225_p4 = scmp.lt.s32.totalorder %s17_s13, %s17_s13 }
   0xc   :  { %p1226_p5 = scmp.lt.s32.totalorder %s1224_s22, %s1220_s21 }
   0xe   :  { %p1227_p6 = por %p1226_p5, %p1225_p4 }
  0x10   :  { %p1228_p7 = pnand %p1227_p6, %p1221_p3 }
  0x12   :  { %1231 = shalt.err (!%p1228_p7)
}
  0x13   :  { %s1283_s23 = smov 64   ;;  %s1284_s24 = smov 4  }
  0x14   :  { %22 = dma.hbm_to_vmem [thread:$0]  %s1609_s0, 64, %s17_s13, [#allocation3], %s1283_s23, %s1283_s23, %s1284_s24  }
  0x15   :  { %s1285_s27 = smov [#allocation5]   ;;  %s1232_s4 = scalar_lea.hbm %s1611_s2, 2048 }
  0x16   :  { %s30_s28 = sshll.u32 %s1285_s27, 4  ;;  %p1233_p8 = scmp.ne.s32.totalorder %s1611_s2, %s1232_s4  ;;  %s31_s28 = int_to_ptr.vmem [resolvable:$true] %s30_s28 }
  0x17   :  { %p1236_p9 = scmp.lt.u32.totalorder %s1232_s4, %s1611_s2 }
  0x19   :  { %p1238_p10 = pnand %p1236_p9, %p1233_p8 }
  0x1b   :  { %1241 = shalt.err (!%p1238_p10)
}
  0x1c   :  { %s1242_s9 = scalar_lea.vmem %s31_s28, 2048  ;;  %p1247_p12 = scmp.lt.s32.totalorder %s31_s28, %s31_s28 }
  0x1d   :  { %p1243_p11 = scmp.ne.s32.totalorder %s31_s28, %s1242_s9  ;;  %p1248_p13 = scmp.lt.s32.totalorder %s1242_s9, %s1242_s9 }
  0x1f   :  { %p1249_p0 = por %p1248_p13, %p1247_p12 }
  0x21   :  { %p1250_p1 = pnand %p1249_p0, %p1243_p11 }
  0x23   :  { %1253 = shalt.err (!%p1250_p1)
}
  0x24   :  { %s1286_s0 = smov 128   ;;  %s1287_s10 = smov 8  }
  0x25   :  { %36 = dma.hbm_to_vmem [thread:$0]  %s1611_s2, 2048, %s31_s28, [#allocation6], %s1286_s0, %s1286_s0, %s1287_s10  }
  0x26   :  { %1276 = dma.done.wait [#allocation3], 128  }
  0x27   :  { %1277 = vsyncadd [#allocation3], 4294967168 }
  0x28   :  { %1278 = dma.done.wait [#allocation6], 2048  }
  0x29   :  { %1279 = vsyncadd [#allocation6], 4294965248  ;;  %v1288_v0 = vmov 0.0|0.0   ;;  %vm1289_vm0 = vmmov 0   ;;  %v1290_v1 = vmov 0.0   ;;  %v45_v2 = vld [vmem:[#allocation5] sm:$0xff] }
  0x2a   :  { %1044 = vmatprep.subr.bf16.mxu1 %v1288_v0  ;;  %1116 = vmatprep.subr.bf16.mxu0 %v1288_v0  ;;  %v46_v3 = vld [vmem:[#allocation5 + $0x8] sm:$0xff]  ;;  %v47_v4 = vld [vmem:[#allocation5 + $0x10] sm:$0xff]  ;;  %v62_v5 = vand.u32 4294901760, %v45_v2  ;;  %v48_v7 = vld [vmem:[#allocation5 + $0x18] sm:$0xff] }
  0x2b   :  { %866 = vmatprep.mubr.msk.f32.mxu1 %vm1289_vm0, %v1290_v1  ;;  %971 = vmatprep.mubr.msk.f32.mxu0 %vm1289_vm0, %v1290_v1  ;;  %v65_v6 = vand.u32 4294901760, %v46_v3  ;;  %v68_v8 = vand.u32 4294901760, %v47_v4  ;;  %v71_v9 = vand.u32 4294901760, %v48_v7  ;;  %v49_v10 = vld [vmem:[#allocation5 + $0x20] sm:$0xff]  ;;  %v50_v11 = vld [vmem:[#allocation5 + $0x28] sm:$0xff]  ;;  %v51_v16 = vld [vmem:[#allocation5 + $0x30] sm:$0xff] }
  0x2c   :  { %v74_v14 = vand.u32 4294901760, %v49_v10  ;;  %v77_v15 = vand.u32 4294901760, %v50_v11  ;;  %v52_v17 = vld [vmem:[#allocation5 + $0x38] sm:$0xff]  ;;  %v80_v19 = vand.u32 4294901760, %v51_v16  ;;  %v1361_v22 = vld [vmem:[#allocation5 + $0x40] sm:$0xff]  ;;  %v1363_v23 = vld [vmem:[#allocation5 + $0x48] sm:$0xff]  ;;  %v1379_v30 = vsub.f32 %v45_v2, %v62_v5 }
  0x2d   :  { %v1345_v12 = vpack.c.bf16 %v65_v6, %v62_v5  ;;  %v1349_v13 = vpack.c.bf16 %v71_v9, %v68_v8  ;;  %v83_v20 = vand.u32 4294901760, %v52_v17  ;;  %v1357_v21 = vld [vmem:[#allocation2] sm:$0xff]  ;;  %v86_v26 = vand.u32 4294901760, %v1361_v22  ;;  %v1375_v28 = vld [vmem:[#allocation5 + $0x50] sm:$0xff]  ;;  %v1391_v36 = vld [vmem:[#allocation5 + $0x60] sm:$0xff] }
  0x2e   :  { %v1355_v18 = vpack.c.bf16 %v77_v15, %v74_v14  ;;  %v44_v24 = vmul.f32 %v1357_v21, %v1357_v21  ;;  %v89_v27 = vand.u32 4294901760, %v1363_v23  ;;  %v1377_v29 = vld [vmem:[#allocation5 + $0x58] sm:$0xff]  ;;  %v1383_v32 = vsub.f32 %v46_v3, %v65_v6  ;;  %v1395_v37 = vld [vmem:[#allocation5 + $0x68] sm:$0xff]  ;;  %v1414_v44 = vld [vmem:[#allocation5 + $0x70] sm:$0xff] }
  0x2f   :  { %1046 = vmatpush3.bf16.msra.mxu1 %v1345_v12  ;;  %1118 = vmatpush3.bf16.msra.mxu0 %v1345_v12  ;;  %v1369_v25 = vpack.c.bf16 %v83_v20, %v80_v19  ;;  %v92_v34 = vand.u32 4294901760, %v1375_v28  ;;  %v95_v35 = vand.u32 4294901760, %v1377_v29  ;;  %v1397_v38 = vsub.f32 %v47_v4, %v68_v8  ;;  %v1416_v45 = vld [vmem:[#allocation5 + $0x78] sm:$0xff] }
  0x30   :  { %1047 = vmatprep.subr.bf16.mxu1 %v1288_v0  ;;  %1119 = vmatprep.subr.bf16.mxu0 %v1288_v0  ;;  %v1381_v31 = vand.u32 4294901760, %v44_v24  ;;  %v1387_v33 = vpack.c.bf16 %v89_v27, %v86_v26  ;;  %v1399_v39 = vsub.f32 %v48_v7, %v71_v9  ;;  %v98_v40 = vand.u32 4294901760, %v1391_v36 }
  0x31   :  { %v1411_v42 = vpack.c.bf16 %v95_v35, %v92_v34  ;;  %v101_v43 = vand.u32 4294901760, %v1395_v37  ;;  %v155_v46 = vand.u32 4294901760, %v1379_v30  ;;  %v162_v47 = vand.u32 4294901760, %v1383_v32 }
  0x32   :  { %v1403_v41 = vsub.f32 %v44_v24, %v1381_v31  ;;  %v1422_v48 = vsub.f32 %v49_v10, %v74_v14  ;;  %v1424_v49 = vsub.f32 %v50_v11, %v77_v15  ;;  %v104_v50 = vand.u32 4294901760, %v1414_v44 }
  0x33   :  { %1049 = vmatpush3.bf16.msra.mxu1 %v1349_v13  ;;  %1121 = vmatpush3.bf16.msra.mxu0 %v1349_v13  ;;  %v107_v51 = vand.u32 4294901760, %v1416_v45  ;;  %v169_v53 = vand.u32 4294901760, %v1397_v38  ;;  %v1436_v54 = vpack.c.bf16 %v101_v43, %v98_v40  ;;  %v156_v55 = vsub.f32 %v1379_v30, %v155_v46 }
  0x34   :  { %1050 = vmatprep.subr.bf16.mxu1 %v1288_v0  ;;  %1122 = vmatprep.subr.bf16.mxu0 %v1288_v0  ;;  %v144_v52 = vand.u32 4294901760, %v1403_v41  ;;  %v163_v56 = vsub.f32 %v1383_v32, %v162_v47  ;;  %v176_v57 = vand.u32 4294901760, %v1399_v39  ;;  %v1443_v58 = vsub.f32 %v51_v16, %v80_v19 }
  0x35   :  { %v1445_v59 = vsub.f32 %v52_v17, %v83_v20  ;;  %v170_v61 = vsub.f32 %v1397_v38, %v169_v53  ;;  %v183_v62 = vand.u32 4294901760, %v1422_v48  ;;  %v190_v63 = vand.u32 4294901760, %v1424_v49 }
  0x36   :  { %v145_v60 = vsub.f32 %v1403_v41, %v144_v52  ;;  %v1457_v2 = vpack.c.bf16 %v107_v51, %v104_v50  ;;  %v157_v3 = vand.u32 4294901760, %v156_v55  ;;  %v164_v4 = vand.u32 4294901760, %v163_v56 }
  0x37   :  { %1052 = vmatpush3.bf16.msra.mxu1 %v1355_v18  ;;  %1124 = vmatpush3.bf16.msra.mxu0 %v1355_v18  ;;  %v177_v5 = vsub.f32 %v1399_v39, %v176_v57  ;;  %v1463_v6 = vsub.f32 %v1361_v22, %v86_v26  ;;  %v1466_v7 = vsub.f32 %v1363_v23, %v89_v27  ;;  %v171_v10 = vand.u32 4294901760, %v170_v61 }
  0x38   :  { %1053 = vmatprep.subr.bf16.mxu1 %v1288_v0  ;;  %1125 = vmatprep.subr.bf16.mxu0 %v1288_v0  ;;  %v1141_v8 = vpack.c.bf16 %v162_v47, %v155_v46  ;;  %v146_v9 = vand.u32 4294901760, %v145_v60  ;;  %v184_v11 = vsub.f32 %v1422_v48, %v183_v62  ;;  %v191_v14 = vsub.f32 %v1424_v49, %v190_v63 }
  0x39   :  { %v1069_v15 = vpack.c.bf16 %v164_v4, %v157_v3  ;;  %v178_v16 = vand.u32 4294901760, %v177_v5  ;;  %v197_v17 = vand.u32 4294901760, %v1443_v58  ;;  %v204_v19 = vand.u32 4294901760, %v1445_v59 }
  0x3a   :  { %v1479_v20 = vsub.f32 %v1375_v28, %v92_v34  ;;  %v1484_v22 = vsub.f32 %v1377_v29, %v95_v35  ;;  %v1144_v23 = vpack.c.bf16 %v176_v57, %v169_v53  ;;  %v185_v24 = vand.u32 4294901760, %v184_v11 }
  0x3b   :  { %1055 = vmatpush3.bf16.msra.mxu1 %v1369_v25  ;;  %1127 = vmatpush3.bf16.msra.mxu0 %v1369_v25  ;;  %v192_v26 = vand.u32 4294901760, %v191_v14  ;;  %v211_v27 = vand.u32 4294901760, %v1463_v6  ;;  %v1072_v46 = vpack.c.bf16 %v178_v16, %v171_v10  ;;  %v198_v47 = vsub.f32 %v1443_v58, %v197_v17 }
  0x3c   :  { %1056 = vmatprep.subr.bf16.mxu1 %v1288_v0  ;;  %1128 = vmatprep.subr.bf16.mxu0 %v1288_v0  ;;  %v205_v28 = vsub.f32 %v1445_v59, %v204_v19  ;;  %v218_v34 = vand.u32 4294901760, %v1466_v7  ;;  %v1495_v29 = vsub.f32 %v1391_v36, %v98_v40  ;;  %v1500_v35 = vsub.f32 %v1395_v37, %v101_v43 }
  0x3d   :  { %v1147_v53 = vpack.c.bf16 %v190_v63, %v183_v62  ;;  %v212_v55 = vsub.f32 %v1463_v6, %v211_v27  ;;  %v225_v56 = vand.u32 4294901760, %v1479_v20  ;;  %v199_v36 = vand.u32 4294901760, %v198_v47 }
  0x3e   :  { %v206_v40 = vand.u32 4294901760, %v205_v28  ;;  %v219_v57 = vsub.f32 %v1466_v7, %v218_v34  ;;  %v232_v37 = vand.u32 4294901760, %v1484_v22  ;;  %v1515_v43 = vsub.f32 %v1414_v44, %v104_v50 }
  0x3f   :  { %1058 = vmatpush3.bf16.msra.mxu1 %v1387_v33  ;;  %1130 = vmatpush3.bf16.msra.mxu0 %v1387_v33  ;;  %v1520_v60 = vsub.f32 %v1416_v45, %v107_v51  ;;  %v1150_v61 = vpack.c.bf16 %v204_v19, %v197_v17  ;;  %v213_v62 = vand.u32 4294901760, %v212_v55  ;;  %v226_v63 = vsub.f32 %v1479_v20, %v225_v56 }
  0x40   :  { %1059 = vmatprep.subr.bf16.mxu1 %v1288_v0  ;;  %1131 = vmatprep.subr.bf16.mxu0 %v1288_v0  ;;  %v239_v3 = vand.u32 4294901760, %v1495_v29  ;;  %v1078_v4 = vpack.c.bf16 %v206_v40, %v199_v36  ;;  %v220_v5 = vand.u32 4294901760, %v219_v57  ;;  %v246_v44 = vand.u32 4294901760, %v1500_v35 }
  0x41   :  { %v1153_v45 = vpack.c.bf16 %v218_v34, %v211_v27  ;;  %v227_v50 = vand.u32 4294901760, %v226_v63  ;;  %v1156_v16 = vpack.c.bf16 %v232_v37, %v225_v56  ;;  %v1096_v55 = vpack.c.bf16 %v1399_v39, %v1397_v38 }
  0x42   :  { %v240_v51 = vsub.f32 %v1495_v29, %v239_v3  ;;  %v1081_v10 = vpack.c.bf16 %v220_v5, %v213_v62  ;;  %v247_v14 = vsub.f32 %v1500_v35, %v246_v44 }
  0x43   :  { %1061 = vmatpush3.bf16.msra.mxu1 %v1411_v42  ;;  %1133 = vmatpush3.bf16.msra.mxu0 %v1411_v42 }
  0x44   :  { %1062 = vmatprep.subr.bf16.mxu1 %v1288_v0  ;;  %1134 = vmatprep.subr.bf16.mxu0 %v1288_v0  ;;  %v241_v17 = vand.u32 4294901760, %v240_v51 }
  0x47   :  { %1064 = vmatpush3.bf16.msra.mxu1 %v1436_v54  ;;  %1136 = vmatpush3.bf16.msra.mxu0 %v1436_v54 }
  0x48   :  { %1065 = vmatprep.subr.bf16.mxu1 %v1288_v0  ;;  %1137 = vmatprep.subr.bf16.mxu0 %v1288_v0 }
  0x4b   :  { %1067 = vmatpush3.bf16.msra.mxu1 %v1457_v2  ;;  %1139 = vmatpush3.bf16.msra.mxu0 %v1457_v2 }
  0x4c   :  { %1068 = vmatprep.subr.bf16.mxu1 %v1288_v0  ;;  %1140 = vmatprep.subr.bf16.mxu0 %v1288_v0 }
  0x4e   :  { %867 = vmatmul.mubr.f32.vlgmr.msra.gmra.mrb[0].mxu1 %v146_v9  ;;  %972 = vmatmul.mubr.f32.vlgmr.msra.gmra.mrb[0].mxu0 %v144_v52  ;;  %v1075_v52 = vpack.c.bf16 %v192_v26, %v185_v24  ;;  %v253_v9 = vand.u32 4294901760, %v1515_v43 }
  0x4f   :  { %1070 = vmatpush3.bf16.msra.mxu1 %v1069_v15  ;;  %1142 = vmatpush3.bf16.msra.mxu0 %v1141_v8  ;;  %v233_v8 = vsub.f32 %v1484_v22, %v232_v37  ;;  %v260_v15 = vand.u32 4294901760, %v1520_v60 }
  0x50   :  { %1071 = vmatprep.subr.bf16.mxu1 %v1288_v0  ;;  %1143 = vmatprep.subr.bf16.mxu0 %v1288_v0  ;;  %v254_v24 = vsub.f32 %v1515_v43, %v253_v9 }
  0x51   :  { %901 = vmatprep.mubr.msk.f32.mxu1 %vm1289_vm0, %v1290_v1  ;;  %1006 = vmatprep.mubr.msk.f32.mxu0 %vm1289_vm0, %v1290_v1  ;;  %v234_v11 = vand.u32 4294901760, %v233_v8  ;;  %v261_v26 = vsub.f32 %v1520_v60, %v260_v15 }
  0x52   :  { %v255_v47 = vand.u32 4294901760, %v254_v24 }
  0x53   :  { %1073 = vmatpush3.bf16.msra.mxu1 %v1072_v46  ;;  %1145 = vmatpush3.bf16.msra.mxu0 %v1144_v23  ;;  %v1084_v19 = vpack.c.bf16 %v234_v11, %v227_v50  ;;  %v248_v23 = vand.u32 4294901760, %v247_v14  ;;  %v1159_v46 = vpack.c.bf16 %v246_v44, %v239_v3  ;;  %v262_v28 = vand.u32 4294901760, %v261_v26 }
  0x54   :  { %1074 = vmatprep.subr.bf16.mxu1 %v1288_v0  ;;  %1146 = vmatprep.subr.bf16.mxu0 %v1288_v0 }
  0x55   :  { %v1087_v27 = vpack.c.bf16 %v248_v23, %v241_v17  ;;  %v1090_v34 = vpack.c.bf16 %v262_v28, %v255_v47 }
  0x57   :  { %1076 = vmatpush3.bf16.msra.mxu1 %v1075_v52  ;;  %1148 = vmatpush3.bf16.msra.mxu0 %v1147_v53  ;;  %v1162_v52 = vpack.c.bf16 %v260_v15, %v253_v9  ;;  %v1093_v53 = vpack.c.bf16 %v1383_v32, %v1379_v30  ;;  %v1099_v30 = vpack.c.bf16 %v1424_v49, %v1422_v48 }
  0x58   :  { %1077 = vmatprep.subr.bf16.mxu1 %v1288_v0  ;;  %1149 = vmatprep.subr.bf16.mxu0 %v1288_v0 }
  0x5b   :  { %1079 = vmatpush3.bf16.msra.mxu1 %v1078_v4  ;;  %1151 = vmatpush3.bf16.msra.mxu0 %v1150_v61 }
  0x5c   :  { %1080 = vmatprep.subr.bf16.mxu1 %v1288_v0  ;;  %1152 = vmatprep.subr.bf16.mxu0 %v1288_v0 }
  0x5f   :  { %1082 = vmatpush3.bf16.msra.mxu1 %v1081_v10  ;;  %1154 = vmatpush3.bf16.msra.mxu0 %v1153_v45 }
  0x60   :  { %1083 = vmatprep.subr.bf16.mxu1 %v1288_v0  ;;  %1155 = vmatprep.subr.bf16.mxu0 %v1288_v0 }
  0x63   :  { %1085 = vmatpush3.bf16.msra.mxu1 %v1084_v19  ;;  %1157 = vmatpush3.bf16.msra.mxu0 %v1156_v16 }
  0x64   :  { %1086 = vmatprep.subr.bf16.mxu1 %v1288_v0  ;;  %1158 = vmatprep.subr.bf16.mxu0 %v1288_v0 }
  0x67   :  { %1088 = vmatpush3.bf16.msra.mxu1 %v1087_v27  ;;  %1160 = vmatpush3.bf16.msra.mxu0 %v1159_v46 }
  0x68   :  { %1089 = vmatprep.subr.bf16.mxu1 %v1288_v0  ;;  %1161 = vmatprep.subr.bf16.mxu0 %v1288_v0 }
  0x6b   :  { %1091 = vmatpush3.bf16.msra.mxu1 %v1090_v34  ;;  %1163 = vmatpush3.bf16.msra.mxu0 %v1162_v52 }
  0x6c   :  { %1092 = vmatprep.subr.bf16.mxu1 %v1288_v0  ;;  %1164 = vmatprep.subr.bf16.mxu0 %v1288_v0 }
  0x6e   :  { %902 = vmatmul.mubr.f32.vlgmr.msra.gmra.mrb[0].mxu1 %v1381_v31  ;;  %1007 = vmatmul.mubr.f32.vlgmr.msra.gmra.mrb[0].mxu0 %v1381_v31 }
  0x6f   :  { %1094 = vmatpush3.bf16.msra.mxu1 %v1093_v53  ;;  %1166 = vmatpush3.bf16.msra.mxu0 %v1345_v12  ;;  %v1102_v12 = vpack.c.bf16 %v1445_v59, %v1443_v58 }
  0x70   :  { %1095 = vmatprep.subr.bf16.mxu1 %v1288_v0  ;;  %1167 = vmatprep.subr.bf16.mxu0 %v1288_v0 }
  0x71   :  { %936 = vmatprep.mubr.msk.f32.mxu1 %vm1289_vm0, %v1290_v1  ;;  %1041 = vmatprep.mubr.msk.f32.mxu0 %vm1289_vm0, %v1290_v1  ;;  %v1105_v1 = vpack.c.bf16 %v1466_v7, %v1463_v6 }
  0x73   :  { %1097 = vmatpush3.bf16.msra.mxu1 %v1096_v55  ;;  %1169 = vmatpush3.bf16.msra.mxu0 %v1349_v13  ;;  %v1108_v13 = vpack.c.bf16 %v1484_v22, %v1479_v20 }
  0x74   :  { %1098 = vmatprep.subr.bf16.mxu1 %v1288_v0  ;;  %1170 = vmatprep.subr.bf16.mxu0 %v1288_v0 }
  0x77   :  { %1100 = vmatpush3.bf16.msra.mxu1 %v1099_v30  ;;  %1172 = vmatpush3.bf16.msra.mxu0 %v1355_v18  ;;  %v1111_v18 = vpack.c.bf16 %v1500_v35, %v1495_v29 }
  0x78   :  { %1101 = vmatprep.subr.bf16.mxu1 %v1288_v0  ;;  %1173 = vmatprep.subr.bf16.mxu0 %v1288_v0 }
  0x7b   :  { %1103 = vmatpush3.bf16.msra.mxu1 %v1102_v12  ;;  %1175 = vmatpush3.bf16.msra.mxu0 %v1369_v25  ;;  %v1114_v25 = vpack.c.bf16 %v1520_v60, %v1515_v43 }
  0x7c   :  { %1104 = vmatprep.subr.bf16.mxu1 %v1288_v0  ;;  %1176 = vmatprep.subr.bf16.mxu0 %v1288_v0 }
  0x7f   :  { %1106 = vmatpush3.bf16.msra.mxu1 %v1105_v1  ;;  %1178 = vmatpush3.bf16.msra.mxu0 %v1387_v33 }
  0x80   :  { %1107 = vmatprep.subr.bf16.mxu1 %v1288_v0  ;;  %1179 = vmatprep.subr.bf16.mxu0 %v1288_v0 }
  0x83   :  { %1109 = vmatpush3.bf16.msra.mxu1 %v1108_v13  ;;  %1181 = vmatpush3.bf16.msra.mxu0 %v1411_v42 }
  0x84   :  { %1110 = vmatprep.subr.bf16.mxu1 %v1288_v0  ;;  %1182 = vmatprep.subr.bf16.mxu0 %v1288_v0 }
  0x87   :  { %1112 = vmatpush3.bf16.msra.mxu1 %v1111_v18  ;;  %1184 = vmatpush3.bf16.msra.mxu0 %v1436_v54  ;;  %v731_v54 = vld [vmem:[%s1610_s1] ss:$0 sm:$0xff] }
  0x88   :  { %1113 = vmatprep.subr.bf16.mxu1 %v1288_v0  ;;  %1185 = vmatprep.subr.bf16.mxu0 %v1288_v0 }
  0x8b   :  { %1115 = vmatpush3.bf16.msra.mxu1 %v1114_v25  ;;  %1187 = vmatpush3.bf16.msra.mxu0 %v1457_v2 }
  0x8e   :  { %937 = vmatmul.mubr.f32.vlgmr.msra.gmra.mrb[0].mxu1 %v1403_v41  ;;  %1042 = vmatmul.mubr.f32.vlgmr.msra.gmra.mrb[0].mxu0 %v1381_v31 }
 0x161   :  { %v403_v32 = vpop.f32.mrb[0].mxu1  ;;  %v698_v33 = vpop.f32.mrb[0].mxu0 }
 0x162   :  { %v1188_v38 = vadd.f32 1e-06, %v403_v32  ;;  %v938_v39 = vpop.f32.mrb[1].mxu1  ;;  %v1043_v42 = vpop.f32.mrb[1].mxu0 }
 0x164   :  { %v1189_v48 = vadd.f32 %v1188_v38, %v698_v33 }
 0x166   :  { %1208 = vrsqrt.f32 %v1189_v48 }
 0x170   :  { %v1209_v49 = vpop.eup %1208 }
 0x171   :  { %v703_v0 = vmul.f32 %v1209_v49, %v1357_v21 }
 0x173   :  { %v711_v58 = vmul.f32 %v731_v54, %v703_v0 }
 0x175   :  { %712 = vst [vmem:[#allocation7] sm:$0xff] %v711_v58 }
 0x176   :  { %717 = vsyncadd [#allocation4], 64  ;;  %s1291_s14 = smov [#allocation7]  }
 0x177   :  { %s718_s15 = sshll.u32 %s1291_s14, 4  ;;  %s719_s15 = int_to_ptr.vmem [resolvable:$true] %s718_s15 }
 0x178   :  { %s1254_s16 = scalar_lea.vmem %s719_s15, 64  ;;  %s1258_s17 = scalar_lea.vmem %s719_s15, 128 }
 0x179   :  { %p1255_p2 = scmp.ne.s32.totalorder %s719_s15, %s1254_s16  ;;  %p1259_p3 = scmp.lt.s32.totalorder %s719_s15, %s719_s15 }
 0x17a   :  { %p1260_p4 = scmp.lt.s32.totalorder %s1258_s17, %s1254_s16 }
 0x17c   :  { %p1261_p5 = por %p1260_p4, %p1259_p3 }
 0x17e   :  { %p1262_p6 = pnand %p1261_p5, %p1255_p2 }
 0x180   :  { %1265 = shalt.err (!%p1262_p6)
}
 0x181   :  { %s1266_s1 = scalar_lea.hbm %s1612_s3, 64 }
 0x182   :  { %p1267_p7 = scmp.ne.s32.totalorder %s1612_s3, %s1266_s1  ;;  %p1270_p8 = scmp.lt.u32.totalorder %s1266_s1, %s1612_s3 }
 0x184   :  { %p1272_p9 = pnand %p1270_p8, %p1267_p7 }
 0x186   :  { %1275 = shalt.err (!%p1272_p9)
}
 0x187   :  { %724 = dma.vmem_to_hbm [thread:$0]  %s719_s15, 64, %s1612_s3, [#allocation4], %s1283_s23, %s1283_s23, %s1284_s24  }
 0x188   :  { %1280 = dma.done.wait [#allocation4], 128  }
 0x189   :  { %1281 = vsyncadd [#allocation4], 4294967168 }
 0x18a   :  { %728 = vsyncpa [#allocation3], 1 }
 0x18b   :  { %729 = vsyncpa [#allocation6], 1 }
 0x18c   :  { %730 = vsyncpa [#allocation4], 1 }

</bundles_post_ra>
